<compile_context>
chip_gen: v7x
topology: tpu7x:2x2x1
jax: 0.10.0
libtpu: 0.0.40
codegen_flags: <defaults>
</compile_context>

<pallas_src>
import functools

import jax
import jax.numpy as jnp
from jax import lax
from jax.experimental import pallas as pl
from jax.experimental.pallas import tpu as pltpu


def _round_up(n, m):
    return ((n + m - 1) // m) * m


def _pad2d(a, rows, cols):
    pr, pc = rows - a.shape[0], cols - a.shape[1]
    if pr == 0 and pc == 0:
        return a
    return jnp.pad(a, ((0, pr), (0, pc)))


def _mlp_kernel(x_ref, w1_ref, b1_ref, w2_ref, b2_ref, w3_ref, b3_ref, o_ref,
                *, num_hidden_layers):
    """One batch tile of: relu(x@w1+b1) -> [relu(h@w2+b2)]*L -> h@w3+b3.

    Weights arrive pre-transposed to [in, out] so every matmul is a standard
    MXU contraction (no lane-axis contraction / in-loop transposes).
    Accumulation is always f32; activations are cast back to the weight dtype
    between layers so bf16 runs keep full bf16 MXU throughput.
    """
    cdt = w1_ref.dtype                       # MXU input dtype (f32 or bf16)

    h = jnp.dot(x_ref[...], w1_ref[...], preferred_element_type=jnp.float32)
    h = jnp.maximum(h + b1_ref[...], 0.0)    # bias/ReLU in f32 (v5e VPU safe)

    if num_hidden_layers > 0:
        w2 = w2_ref[...]
        b2 = b2_ref[...]                     # hoisted: one broadcast, not N

        def hidden(hh):
            hh = jnp.dot(hh.astype(cdt), w2, preferred_element_type=jnp.float32)
            return jnp.maximum(hh + b2, 0.0)

        if num_hidden_layers <= 4:           # shallow: full Python unroll
            for _ in range(num_hidden_layers):
                h = hidden(h)
        else:                                # deep: partial unroll bounds vregs
            h = lax.fori_loop(0, num_hidden_layers, lambda _, hh: hidden(hh),
                              h, unroll=4)

    y = jnp.dot(h.astype(cdt), w3_ref[...], preferred_element_type=jnp.float32)
    o_ref[...] = (y + b3_ref[...]).astype(o_ref.dtype)


def prepare_params(params, compute_dtype=jnp.float32):
    """One-time weight preprocessing. Call once; reuse across forward calls.

    Pads every feature dim to a multiple of 128 (lane-dense & numerically
    exact: padded units get zero weight+bias, relu(0)=0, padded outputs are
    sliced off), transposes PyTorch [out, in] weights to [in, out] and casts
    to `compute_dtype`.

    bf16 compute_dtype is recommended on ALL generations when accuracy allows
    (v5e's MXU is bf16 too); accumulation and the bias/ReLU epilogue stay f32.
    """
    hid_dim, in_dim = params["w1"].shape
    out_dim = params["w3"].shape[0]
    in_p, hid_p, out_p = (_round_up(d, 128) for d in (in_dim, hid_dim, out_dim))

    prep = {
        "w1": _pad2d(params["w1"].T, in_p, hid_p).astype(compute_dtype),
        "w2": _pad2d(params["w2"].T, hid_p, hid_p).astype(compute_dtype),
        "w3": _pad2d(params["w3"].T, hid_p, out_p).astype(compute_dtype),
        "b1": _pad2d(params["b1"][None, :].astype(jnp.float32), 1, hid_p),
        "b2": _pad2d(params["b2"][None, :].astype(jnp.float32), 1, hid_p),
        "b3": _pad2d(params["b3"][None, :].astype(jnp.float32), 1, out_p),
    }
    meta = {"in_dim": in_dim, "hid_dim": hid_dim, "out_dim": out_dim,
            "in_p": in_p, "hid_p": hid_p, "out_p": out_p}
    return prep, meta


@functools.lru_cache(maxsize=None)
def _vmem_budget_bytes():
    """Generation-aware VMEM budget: 3/4 of physical, capped at 100 MiB.
    -> ~96 MiB on v5e/v6e (128 MiB physical), 48 MiB on v7x (64 MiB per TC)."""
    try:
        cap = int(pltpu.get_tpu_info().vmem_capacity_bytes)
    except Exception:
        cap = 64 * 1024 * 1024            # conservative fallback
    return min((cap * 3) // 4, 100 * 1024 * 1024)


def _pick_batch_tile(batch, in_p, hid_p, out_p, cbytes, obytes, budget):
    # Weights/biases are whole-array VMEM resident -> single buffered (x1).
    weight_bytes = cbytes * (in_p * hid_p + hid_p * hid_p + hid_p * out_p) \
        + 4 * (2 * hid_p + out_p)
    tb = 1024                              # big tiles amortize grid-step cost
    while tb > 8:
        tile_bytes = (2 * tb * in_p * cbytes      # x   (double-buffered)
                      + 2 * tb * out_p * obytes   # out (double-buffered)
                      + tb * hid_p * 4            # f32 activation
                      + tb * hid_p * cbytes)      # cast copy fed to next matmul
        if weight_bytes + tile_bytes <= budget:
            break
        tb //= 2
    if batch > 8:
        # >= 2 grid steps whenever the batch allows so the "parallel" axis
        # gives v7x's second TensorCore work (and enables in/out overlap).
        tb = min(tb, _round_up(-(-batch // 2), 8))
    else:
        tb = 8
    return max(tb, 8)


@functools.partial(
    jax.jit,
    static_argnames=("layer", "tb", "out_dim", "out_dtype", "vmem_limit"))
def _forward_impl(x, w1, b1, w2, b2, w3, b3, *, layer, tb, out_dim, out_dtype,
                  vmem_limit):
    batch, in_dim = x.shape
    in_p, hid_p = w1.shape
    out_p = w3.shape[1]
    cdt = w1.dtype
    cbytes = jnp.dtype(cdt).itemsize

    batch_p = _round_up(batch, tb)
    x_p = jnp.pad(x, ((0, batch_p - batch), (0, in_p - in_dim))).astype(cdt)

    grid = (batch_p // tb,)
    vmem_space = pltpu.MemorySpace.VMEM    # whole array resident, single-buffered

    cost = pl.CostEstimate(
        flops=2 * batch_p * (in_p * hid_p + layer * hid_p * hid_p
                             + hid_p * out_p),
        transcendentals=0,
        bytes_accessed=int(
            batch_p * in_p * cbytes
            + (in_p * hid_p + hid_p * hid_p + hid_p * out_p) * cbytes
            + (2 * hid_p + out_p) * 4
            + batch_p * out_p * jnp.dtype(out_dtype).itemsize))

    out = pl.pallas_call(
        functools.partial(_mlp_kernel, num_hidden_layers=layer),
        out_shape=jax.ShapeDtypeStruct((batch_p, out_p), out_dtype),
        grid_spec=pltpu.PrefetchScalarGridSpec(
            num_scalar_prefetch=0,
            grid=grid,
            in_specs=[
                pl.BlockSpec((tb, in_p), lambda i: (i, 0)),   # x: batch-tiled
                pl.BlockSpec(memory_space=vmem_space),        # w1 [in_p, hid_p]
                pl.BlockSpec(memory_space=vmem_space),        # b1 [1, hid_p]
                pl.BlockSpec(memory_space=vmem_space),        # w2 [hid_p, hid_p]
                pl.BlockSpec(memory_space=vmem_space),        # b2 [1, hid_p]
                pl.BlockSpec(memory_space=vmem_space),        # w3 [hid_p, out_p]
                pl.BlockSpec(memory_space=vmem_space),        # b3 [1, out_p]
            ],
            out_specs=pl.BlockSpec((tb, out_p), lambda i: (i, 0)),
        ),
        compiler_params=pltpu.CompilerParams(
            dimension_semantics=("parallel",),
            vmem_limit_bytes=int(vmem_limit)),
        cost_estimate=cost,
    )(x_p, w1, b1, w2, b2, w3, b3)

    return out[:batch, :out_dim]


def neural_net_forward(x, prep, meta, *, layer=0, out_dtype=jnp.float32):
    """Forward pass matching PyTorch NeuralNet.forward.

    `prep`/`meta` come from `prepare_params` (call once; do NOT re-prepare
    per step). `out_dtype=jnp.bfloat16` halves output writeback when the
    consumer allows; in-kernel accumulation is always f32.
    """
    batch, in_dim = x.shape
    assert in_dim == meta["in_dim"], "x feature dim mismatch vs. prepared params"
    cbytes = jnp.dtype(prep["w1"].dtype).itemsize
    obytes = jnp.dtype(out_dtype).itemsize
    budget = _vmem_budget_bytes()
    tb = _pick_batch_tile(batch, meta["in_p"], meta["hid_p"], meta["out_p"],
                          cbytes, obytes, budget)
    return _forward_impl(x, prep["w1"], prep["b1"], prep["w2"], prep["b2"],
                         prep["w3"], prep["b3"],
                         layer=layer, tb=tb, out_dim=meta["out_dim"],
                         out_dtype=out_dtype, vmem_limit=budget)


def _init_linear(key, in_features, out_features):
    # Deterministic PyTorch-style uniform(-1/sqrt(in), 1/sqrt(in)) init.
    kw, kb = jax.random.split(key)
    bound = 1.0 / (in_features ** 0.5)
    w = jax.random.uniform(kw, (out_features, in_features),
                           minval=-bound, maxval=bound, dtype=jnp.float32)
    b = jax.random.uniform(kb, (out_features,),
                           minval=-bound, maxval=bound, dtype=jnp.float32)
    return w, b


def _reference(x, params, layer):
    h = jnp.maximum(x @ params["w1"].T + params["b1"], 0.0)
    for _ in range(layer):
        h = jnp.maximum(h @ params["w2"].T + params["b2"], 0.0)
    return h @ params["w3"].T + params["b3"]


if __name__ == "__main__":
    input_dim, hidden_dim, output_dim = 16, 32, 8
    layer = 2

    key = jax.random.PRNGKey(0)
    k_x, k_x2, k1, k2, k3 = jax.random.split(key, 5)

    w1, b1 = _init_linear(k1, input_dim, hidden_dim)
    w2, b2 = _init_linear(k2, hidden_dim, hidden_dim)
    w3, b3 = _init_linear(k3, hidden_dim, output_dim)
    params = {"w1": w1, "b1": b1, "w2": w2, "b2": b2, "w3": w3, "b3": b3}

    # One-time weight prep (pad / transpose to [in,out] / cast) -- f32 path.
    prep32, meta = prepare_params(params, compute_dtype=jnp.float32)

    # Small batch (matches the original test shapes).
    x = jax.random.normal(k_x, (4, input_dim), dtype=jnp.float32)
    y = neural_net_forward(x, prep32, meta, layer=layer)
    jax.block_until_ready(y)
    assert jnp.allclose(y, _reference(x, params, layer), atol=2e-5, rtol=1e-5)

    # Larger, non-aligned batch: exercises padding + a 2-step "parallel" grid.
    x2 = jax.random.normal(k_x2, (300, input_dim), dtype=jnp.float32)
    y2 = neural_net_forward(x2, prep32, meta, layer=layer)
    jax.block_until_ready(y2)
    assert jnp.allclose(y2, _reference(x2, params, layer), atol=2e-5, rtol=1e-5)

    # Deep repeat (layer > 4): exercises the partially-unrolled fori_loop path.
    y3 = neural_net_forward(x, prep32, meta, layer=6)
    jax.block_until_ready(y3)
    assert jnp.allclose(y3, _reference(x, params, 6), atol=2e-5, rtol=1e-5)

    # bf16 compute path (f32 accumulation, bf16 output); looser tolerance.
    prep16, meta16 = prepare_params(params, compute_dtype=jnp.bfloat16)
    y4 = neural_net_forward(x2, prep16, meta16, layer=layer,
                            out_dtype=jnp.bfloat16)
    jax.block_until_ready(y4)
    assert jnp.allclose(y4.astype(jnp.float32), _reference(x2, params, layer),
                        atol=1e-1, rtol=5e-2)

    print("KERNEL_OK")
</pallas_src>

<mosaic_0001>
module attributes {stable_mosaic.version = 11 : i64} {
  func.func @_mlp_kernel(%arg0: i32, %arg1: memref<8x128xf32, #tpu.memory_space<vmem>>, %arg2: memref<128x128xf32, #tpu.memory_space<vmem>>, %arg3: memref<1x128xf32, #tpu.memory_space<vmem>>, %arg4: memref<128x128xf32, #tpu.memory_space<vmem>>, %arg5: memref<1x128xf32, #tpu.memory_space<vmem>>, %arg6: memref<128x128xf32, #tpu.memory_space<vmem>>, %arg7: memref<1x128xf32, #tpu.memory_space<vmem>>, %arg8: memref<8x128xf32, #tpu.memory_space<vmem>>) attributes {dimension_semantics = [#tpu.dimension_semantics<parallel>], iteration_bounds = array<i64: 1>, scalar_prefetch = 0 : i64, scratch_operands = 0 : i64, tpu.core_type = #tpu.core_type<tc>, window_params = [{transform_indices = @transform_0, window_bounds = array<i64: 8, 128>}, {pipeline_mode = #tpu.pipeline_mode<synchronous>, transform_indices = @transform_1, window_bounds = array<i64: 128, 128>}, {pipeline_mode = #tpu.pipeline_mode<synchronous>, transform_indices = @transform_2, window_bounds = array<i64: 1, 128>}, {pipeline_mode = #tpu.pipeline_mode<synchronous>, transform_indices = @transform_3, window_bounds = array<i64: 128, 128>}, {pipeline_mode = #tpu.pipeline_mode<synchronous>, transform_indices = @transform_4, window_bounds = array<i64: 1, 128>}, {pipeline_mode = #tpu.pipeline_mode<synchronous>, transform_indices = @transform_5, window_bounds = array<i64: 128, 128>}, {pipeline_mode = #tpu.pipeline_mode<synchronous>, transform_indices = @transform_6, window_bounds = array<i64: 1, 128>}, {transform_indices = @transform_7, window_bounds = array<i64: 8, 128>}]} {
    %c0 = arith.constant 0 : index
    %c0_0 = arith.constant 0 : index
    %0 = vector.load %arg1[%c0, %c0_0] : memref<8x128xf32, #tpu.memory_space<vmem>>, vector<8x128xf32>
    %c0_1 = arith.constant 0 : index
    %c0_2 = arith.constant 0 : index
    %1 = vector.load %arg2[%c0_1, %c0_2] : memref<128x128xf32, #tpu.memory_space<vmem>>, vector<128x128xf32>
    %cst = arith.constant dense<0.000000e+00> : vector<8x128xf32>
    %2 = tpu.matmul %0, %1, %cst {dimension_numbers = #tpu.dot_dimension_numbers<[1], [0], [0], [1], [0, 0, 1, 1], [], []>} : vector<8x128xf32>, vector<128x128xf32>, vector<8x128xf32> -> vector<8x128xf32>
    %c0_3 = arith.constant 0 : index
    %c0_4 = arith.constant 0 : index
    %3 = vector.load %arg3[%c0_3, %c0_4] : memref<1x128xf32, #tpu.memory_space<vmem>>, vector<1x128xf32>
    %4 = vector.broadcast %3 : vector<1x128xf32> to vector<8x128xf32>
    %5 = arith.addf %2, %4 : vector<8x128xf32>
    %cst_5 = arith.constant 0.000000e+00 : f32
    %6 = vector.broadcast %cst_5 : f32 to vector<8x128xf32>
    %7 = arith.maximumf %5, %6 : vector<8x128xf32>
    %c0_6 = arith.constant 0 : index
    %c0_7 = arith.constant 0 : index
    %8 = vector.load %arg4[%c0_6, %c0_7] : memref<128x128xf32, #tpu.memory_space<vmem>>, vector<128x128xf32>
    %c0_8 = arith.constant 0 : index
    %c0_9 = arith.constant 0 : index
    %9 = vector.load %arg5[%c0_8, %c0_9] : memref<1x128xf32, #tpu.memory_space<vmem>>, vector<1x128xf32>
    %cst_10 = arith.constant dense<0.000000e+00> : vector<8x128xf32>
    %10 = tpu.matmul %7, %8, %cst_10 {dimension_numbers = #tpu.dot_dimension_numbers<[1], [0], [0], [1], [0, 0, 1, 1], [], []>} : vector<8x128xf32>, vector<128x128xf32>, vector<8x128xf32> -> vector<8x128xf32>
    %11 = vector.broadcast %9 : vector<1x128xf32> to vector<8x128xf32>
    %12 = arith.addf %10, %11 : vector<8x128xf32>
    %cst_11 = arith.constant 0.000000e+00 : f32
    %13 = vector.broadcast %cst_11 : f32 to vector<8x128xf32>
    %14 = arith.maximumf %12, %13 : vector<8x128xf32>
    %cst_12 = arith.constant dense<0.000000e+00> : vector<8x128xf32>
    %15 = tpu.matmul %14, %8, %cst_12 {dimension_numbers = #tpu.dot_dimension_numbers<[1], [0], [0], [1], [0, 0, 1, 1], [], []>} : vector<8x128xf32>, vector<128x128xf32>, vector<8x128xf32> -> vector<8x128xf32>
    %16 = vector.broadcast %9 : vector<1x128xf32> to vector<8x128xf32>
    %17 = arith.addf %15, %16 : vector<8x128xf32>
    %cst_13 = arith.constant 0.000000e+00 : f32
    %18 = vector.broadcast %cst_13 : f32 to vector<8x128xf32>
    %19 = arith.maximumf %17, %18 : vector<8x128xf32>
    %c0_14 = arith.constant 0 : index
    %c0_15 = arith.constant 0 : index
    %20 = vector.load %arg6[%c0_14, %c0_15] : memref<128x128xf32, #tpu.memory_space<vmem>>, vector<128x128xf32>
    %cst_16 = arith.constant dense<0.000000e+00> : vector<8x128xf32>
    %21 = tpu.matmul %19, %20, %cst_16 {dimension_numbers = #tpu.dot_dimension_numbers<[1], [0], [0], [1], [0, 0, 1, 1], [], []>} : vector<8x128xf32>, vector<128x128xf32>, vector<8x128xf32> -> vector<8x128xf32>
    %c0_17 = arith.constant 0 : index
    %c0_18 = arith.constant 0 : index
    %22 = vector.load %arg7[%c0_17, %c0_18] : memref<1x128xf32, #tpu.memory_space<vmem>>, vector<1x128xf32>
    %23 = vector.broadcast %22 : vector<1x128xf32> to vector<8x128xf32>
    %24 = arith.addf %21, %23 : vector<8x128xf32>
    %c0_19 = arith.constant 0 : index
    %c0_20 = arith.constant 0 : index
    %25 = vector.load %arg8[%c0_19, %c0_20] : memref<8x128xf32, #tpu.memory_space<vmem>>, vector<8x128xf32>
    tpu.vector_store %arg8[%c0_19, %c0_20], %24 {strides = array<i32>} : memref<8x128xf32, #tpu.memory_space<vmem>>, vector<8x128xf32>,
    return
  }
  func.func @transform_0(%arg0: i32) -> (i32, i32) {
    %c0_i32 = arith.constant 0 : i32
    %c0_i32_0 = arith.constant 0 : i32
    return %arg0, %c0_i32 : i32, i32
  }
  func.func @transform_1(%arg0: i32) -> (i32, i32) {
    %c0_i32 = arith.constant 0 : i32
    %c0_i32_0 = arith.constant 0 : i32
    %c0_i32_1 = arith.constant 0 : i32
    return %c0_i32, %c0_i32_0 : i32, i32
  }
  func.func @transform_2(%arg0: i32) -> (i32, i32) {
    %c0_i32 = arith.constant 0 : i32
    %c0_i32_0 = arith.constant 0 : i32
    %c0_i32_1 = arith.constant 0 : i32
    return %c0_i32, %c0_i32_0 : i32, i32
  }
  func.func @transform_3(%arg0: i32) -> (i32, i32) {
    %c0_i32 = arith.constant 0 : i32
    %c0_i32_0 = arith.constant 0 : i32
    %c0_i32_1 = arith.constant 0 : i32
    return %c0_i32, %c0_i32_0 : i32, i32
  }
  func.func @transform_4(%arg0: i32) -> (i32, i32) {
    %c0_i32 = arith.constant 0 : i32
    %c0_i32_0 = arith.constant 0 : i32
    %c0_i32_1 = arith.constant 0 : i32
    return %c0_i32, %c0_i32_0 : i32, i32
  }
  func.func @transform_5(%arg0: i32) -> (i32, i32) {
    %c0_i32 = arith.constant 0 : i32
    %c0_i32_0 = arith.constant 0 : i32
    %c0_i32_1 = arith.constant 0 : i32
    return %c0_i32, %c0_i32_0 : i32, i32
  }
  func.func @transform_6(%arg0: i32) -> (i32, i32) {
    %c0_i32 = arith.constant 0 : i32
    %c0_i32_0 = arith.constant 0 : i32
    %c0_i32_1 = arith.constant 0 : i32
    return %c0_i32, %c0_i32_0 : i32, i32
  }
  func.func @transform_7(%arg0: i32) -> (i32, i32) {
    %c0_i32 = arith.constant 0 : i32
    %c0_i32_0 = arith.constant 0 : i32
    return %arg0, %c0_i32 : i32, i32
  }
}

</mosaic_0001>

<bundles_post_ra>
// kernel: _forward_impl.1
= control target key start
LH: loop header
LB: loop body
LE: loop exit
PB: predicated region body
PF: predicated region fallthrough
CT: control target
= control target key end

     0   :  { %12 = vsyncpa [#allocation3], 0  ;;  %s967_s0 = inlined_call_operand.vmem [shape: f32[8,128], index: 0, kind: input, shape index: {}]   ;;  %s968_s1 = inlined_call_operand.hbm [shape: f32[128,128], index: 1, kind: input, shape index: {}]   ;;  %s969_s2 = inlined_call_operand.vmem [shape: f32[1,128], index: 2, kind: input, shape index: {}]   ;;  %s970_s3 = inlined_call_operand.hbm [shape: f32[128,128], index: 3, kind: input, shape index: {}]   ;;  %s971_s4 = inlined_call_operand.vmem [shape: f32[1,128], index: 4, kind: input, shape index: {}]   ;;  %s972_s5 = inlined_call_operand.hbm [shape: f32[128,128], index: 5, kind: input, shape index: {}]   ;;  %s973_s6 = inlined_call_operand.vmem [shape: f32[1,128], index: 6, kind: input, shape index: {}]   ;;  %s974_s7 = inlined_call_operand.vmem [shape: f32[8,128], index: 7, kind: output, shape index: {}]  }
   0x1   :  { %13 = vsyncpa [#allocation5], 0  ;;  %s812_s24 = smov [#allocation4]   ;;  %s813_s26 = smov [#allocation2]  }
   0x2   :  { %s35_s25 = sshll.u32 %s812_s24, 4  ;;  %s21_s27 = sshll.u32 %s813_s26, 4  ;;  %s36_s25 = int_to_ptr.vmem [resolvable:$true] %s35_s25  ;;  %s860_s27 = int_to_ptr.vmem [resolvable:$true] %s21_s27 }
   0x3   :  { %s742_s30 = scalar_lea.hbm %s970_s3, 2048 }
   0x4   :  { %p743_p0 = scmp.ne.s32.totalorder %s970_s3, %s742_s30  ;;  %p746_p1 = scmp.lt.u32.totalorder %s742_s30, %s970_s3 }
   0x6   :  { %p748_p2 = pnand %p746_p1, %p743_p0 }
   0x8   :  { %751 = shalt.err (!%p748_p2)
}
   0x9   :  { %s752_s12 = scalar_lea.vmem %s36_s25, 2048  ;;  %p757_p4 = scmp.lt.s32.totalorder %s36_s25, %s36_s25 }
   0xa   :  { %p753_p3 = scmp.ne.s32.totalorder %s36_s25, %s752_s12  ;;  %p758_p5 = scmp.lt.s32.totalorder %s752_s12, %s752_s12 }
   0xc   :  { %p759_p6 = por %p758_p5, %p757_p4 }
   0xe   :  { %p760_p7 = pnand %p759_p6, %p753_p3 }
  0x10   :  { %763 = shalt.err (!%p760_p7)
}
  0x11   :  { %s814_s13 = smov 128   ;;  %s815_s14 = smov 8  }
  0x12   :  { %41 = dma.hbm_to_vmem [thread:$0]  %s970_s3, 2048, %s36_s25, [#allocation5], %s814_s13, %s814_s13, %s815_s14  }
  0x13   :  { %s764_s19 = scalar_lea.hbm %s968_s1, 2048 }
  0x14   :  { %p765_p8 = scmp.ne.s32.totalorder %s968_s1, %s764_s19  ;;  %p768_p9 = scmp.lt.u32.totalorder %s764_s19, %s968_s1 }
  0x16   :  { %p770_p10 = pnand %p768_p9, %p765_p8 }
  0x18   :  { %773 = shalt.err (!%p770_p10)
}
  0x19   :  { %s774_s24 = scalar_lea.vmem %s860_s27, 2048  ;;  %p779_p12 = scmp.lt.s32.totalorder %s860_s27, %s860_s27 }
  0x1a   :  { %p775_p11 = scmp.ne.s32.totalorder %s860_s27, %s774_s24  ;;  %p780_p13 = scmp.lt.s32.totalorder %s774_s24, %s774_s24 }
  0x1c   :  { %p781_p0 = por %p780_p13, %p779_p12 }
  0x1e   :  { %p782_p1 = pnand %p781_p0, %p775_p11 }
  0x20   :  { %785 = shalt.err (!%p782_p1)
}
  0x21   :  { %27 = dma.hbm_to_vmem [thread:$0]  %s968_s1, 2048, %s860_s27, [#allocation3], %s814_s13, %s814_s13, %s815_s14  }
  0x22   :  { %s816_s26 = smov [#allocation6]   ;;  %s786_s8 = scalar_lea.hbm %s972_s5, 2048 }
  0x23   :  { %s49_s28 = sshll.u32 %s816_s26, 4  ;;  %p787_p2 = scmp.ne.s32.totalorder %s972_s5, %s786_s8  ;;  %s50_s28 = int_to_ptr.vmem [resolvable:$true] %s49_s28 }
  0x24   :  { %p790_p3 = scmp.lt.u32.totalorder %s786_s8, %s972_s5 }
  0x26   :  { %p792_p4 = pnand %p790_p3, %p787_p2 }
  0x28   :  { %795 = shalt.err (!%p792_p4)
}
  0x29   :  { %s796_s15 = scalar_lea.vmem %s50_s28, 2048  ;;  %p801_p6 = scmp.lt.s32.totalorder %s50_s28, %s50_s28 }
  0x2a   :  { %p797_p5 = scmp.ne.s32.totalorder %s50_s28, %s796_s15  ;;  %p802_p7 = scmp.lt.s32.totalorder %s796_s15, %s796_s15 }
  0x2c   :  { %p803_p8 = por %p802_p7, %p801_p6 }
  0x2e   :  { %p804_p9 = pnand %p803_p8, %p797_p5 }
  0x30   :  { %807 = shalt.err (!%p804_p9)
}
  0x31   :  { %55 = dma.hbm_to_vmem [thread:$0]  %s972_s5, 2048, %s50_s28, [#allocation5], %s814_s13, %s814_s13, %s815_s14  }
  0x32   :  { %808 = dma.done.wait [#allocation3], 2048  }
  0x33   :  { %809 = vsyncadd [#allocation3], 4294965248 }
  0x34   :  { %810 = dma.done.wait [#allocation5], 4096  }
  0x35   :  { %811 = vsyncadd [#allocation5], 4294963200  ;;  %v817_v0 = vmov 0.0|0.0   ;;  %vm818_vm0 = vmmov 0   ;;  %v819_v1 = vmov 0.0   ;;  %v68_v2 = vld [vmem:[#allocation2] sm:$0xff] }
  0x36   :  { %638 = vmatprep.subr.bf16.mxu0 %v817_v0  ;;  %530 = vmatprep.mubr.msk.f32.mxu0 %vm818_vm0, %v819_v1  ;;  %v69_v3 = vld [vmem:[#allocation2 + $0x8] sm:$0xff]  ;;  %v70_v4 = vld [vmem:[#allocation2 + $0x10] sm:$0xff]  ;;  %v71_v6 = vld [vmem:[#allocation2 + $0x18] sm:$0xff] }
  0x37   :  { %662 = vmatprep.subr.bf16.mxu1 %v817_v0  ;;  %565 = vmatprep.mubr.msk.f32.mxu1 %vm818_vm0, %v819_v1  ;;  %v639_v5 = vpack.c.bf16 %v69_v3, %v68_v2  ;;  %v642_v7 = vpack.c.bf16 %v71_v6, %v70_v4  ;;  %v72_v8 = vld [vmem:[#allocation2 + $0x20] sm:$0xff]  ;;  %v73_v9 = vld [vmem:[#allocation2 + $0x28] sm:$0xff]  ;;  %v164_v12 = vld [vmem:[#allocation4 + $0x10] sm:$0xff] }
  0x38   :  { %v162_v10 = vld [vmem:[#allocation4] sm:$0xff]  ;;  %v163_v11 = vld [vmem:[#allocation4 + $0x8] sm:$0xff]  ;;  %v165_v13 = vld [vmem:[#allocation4 + $0x18] sm:$0xff]  ;;  %v645_v14 = vpack.c.bf16 %v73_v9, %v72_v8 }
  0x39   :  { %640 = vmatpush3.bf16.msra.mxu0 %v639_v5  ;;  %v663_v15 = vpack.c.bf16 %v163_v11, %v162_v10  ;;  %v74_v16 = vld [vmem:[#allocation2 + $0x30] sm:$0xff]  ;;  %v75_v17 = vld [vmem:[#allocation2 + $0x38] sm:$0xff]  ;;  %v666_v18 = vpack.c.bf16 %v165_v13, %v164_v12  ;;  %v166_v19 = vld [vmem:[#allocation4 + $0x20] sm:$0xff] }
  0x3a   :  { %641 = vmatprep.subr.bf16.mxu0 %v817_v0  ;;  %v167_v20 = vld [vmem:[#allocation4 + $0x28] sm:$0xff]  ;;  %v648_v21 = vpack.c.bf16 %v75_v17, %v74_v16  ;;  %v76_v22 = vld [vmem:[#allocation2 + $0x40] sm:$0xff]  ;;  %v168_v25 = vld [vmem:[#allocation4 + $0x30] sm:$0xff] }
  0x3b   :  { %664 = vmatpush3.bf16.msra.mxu1 %v663_v15  ;;  %v77_v23 = vld [vmem:[#allocation2 + $0x48] sm:$0xff]  ;;  %v669_v24 = vpack.c.bf16 %v167_v20, %v166_v19  ;;  %v169_v26 = vld [vmem:[#allocation4 + $0x38] sm:$0xff]  ;;  %v78_v28 = vld [vmem:[#allocation2 + $0x50] sm:$0xff] }
  0x3c   :  { %665 = vmatprep.subr.bf16.mxu1 %v817_v0  ;;  %v651_v27 = vpack.c.bf16 %v77_v23, %v76_v22  ;;  %v79_v29 = vld [vmem:[#allocation2 + $0x58] sm:$0xff]  ;;  %v672_v30 = vpack.c.bf16 %v169_v26, %v168_v25  ;;  %v170_v31 = vld [vmem:[#allocation4 + $0x40] sm:$0xff]  ;;  %v171_v32 = vld [vmem:[#allocation4 + $0x48] sm:$0xff] }
  0x3d   :  { %643 = vmatpush3.bf16.msra.mxu0 %v642_v7  ;;  %v654_v33 = vpack.c.bf16 %v79_v29, %v78_v28  ;;  %v80_v34 = vld [vmem:[#allocation2 + $0x60] sm:$0xff]  ;;  %v81_v35 = vld [vmem:[#allocation2 + $0x68] sm:$0xff]  ;;  %v675_v36 = vpack.c.bf16 %v171_v32, %v170_v31  ;;  %v172_v37 = vld [vmem:[#allocation4 + $0x50] sm:$0xff] }
  0x3e   :  { %644 = vmatprep.subr.bf16.mxu0 %v817_v0  ;;  %v173_v38 = vld [vmem:[#allocation4 + $0x58] sm:$0xff]  ;;  %v657_v39 = vpack.c.bf16 %v81_v35, %v80_v34  ;;  %v82_v40 = vld [vmem:[#allocation2 + $0x70] sm:$0xff]  ;;  %v174_v43 = vld [vmem:[#allocation4 + $0x60] sm:$0xff] }
  0x3f   :  { %667 = vmatpush3.bf16.msra.mxu1 %v666_v18  ;;  %v83_v41 = vld [vmem:[#allocation2 + $0x78] sm:$0xff]  ;;  %v678_v42 = vpack.c.bf16 %v173_v38, %v172_v37  ;;  %v175_v44 = vld [vmem:[#allocation4 + $0x68] sm:$0xff]  ;;  %v67_v47 = vld [vmem:[%s967_s0] sm:$0xff] }
  0x40   :  { %668 = vmatprep.subr.bf16.mxu1 %v817_v0  ;;  %v660_v45 = vpack.c.bf16 %v83_v41, %v82_v40  ;;  %v681_v46 = vpack.c.bf16 %v175_v44, %v174_v43  ;;  %v176_v48 = vld [vmem:[#allocation4 + $0x70] sm:$0xff]  ;;  %v177_v49 = vld [vmem:[#allocation4 + $0x78] sm:$0xff]  ;;  %v427_v51 = vld [vmem:[%s969_s2] ss:$0 sm:$0xff] }
  0x41   :  { %646 = vmatpush3.bf16.msra.mxu0 %v645_v14  ;;  %v684_v50 = vpack.c.bf16 %v177_v49, %v176_v48  ;;  %v327_v56 = vld [vmem:[#allocation6] sm:$0xff]  ;;  %v328_v57 = vld [vmem:[#allocation6 + $0x8] sm:$0xff]  ;;  %v329_v58 = vld [vmem:[#allocation6 + $0x10] sm:$0xff] }
  0x42   :  { %647 = vmatprep.subr.bf16.mxu0 %v817_v0  ;;  %v711_v59 = vpack.c.bf16 %v328_v57, %v327_v56  ;;  %v330_v60 = vld [vmem:[#allocation6 + $0x18] sm:$0xff]  ;;  %v331_v62 = vld [vmem:[#allocation6 + $0x20] sm:$0xff]  ;;  %v332_v63 = vld [vmem:[#allocation6 + $0x28] sm:$0xff] }
  0x43   :  { %670 = vmatpush3.bf16.msra.mxu1 %v669_v24  ;;  %v714_v61 = vpack.c.bf16 %v330_v60, %v329_v58  ;;  %v717_v2 = vpack.c.bf16 %v332_v63, %v331_v62  ;;  %v333_v3 = vld [vmem:[#allocation6 + $0x30] sm:$0xff]  ;;  %v334_v4 = vld [vmem:[#allocation6 + $0x38] sm:$0xff]  ;;  %v336_v6 = vld [vmem:[#allocation6 + $0x48] sm:$0xff] }
  0x44   :  { %671 = vmatprep.subr.bf16.mxu1 %v817_v0  ;;  %v720_v5 = vpack.c.bf16 %v334_v4, %v333_v3  ;;  %v337_v8 = vld [vmem:[#allocation6 + $0x50] sm:$0xff]  ;;  %v338_v9 = vld [vmem:[#allocation6 + $0x58] sm:$0xff]  ;;  %v339_v11 = vld [vmem:[#allocation6 + $0x60] sm:$0xff] }
  0x45   :  { %649 = vmatpush3.bf16.msra.mxu0 %v648_v21  ;;  %v726_v10 = vpack.c.bf16 %v338_v9, %v337_v8  ;;  %v340_v12 = vld [vmem:[#allocation6 + $0x68] sm:$0xff]  ;;  %v428_v14 = vld [vmem:[%s971_s4] ss:$0 sm:$0xff]  ;;  %v341_v19 = vld [vmem:[#allocation6 + $0x70] sm:$0xff] }
  0x46   :  { %650 = vmatprep.subr.bf16.mxu0 %v817_v0  ;;  %v729_v13 = vpack.c.bf16 %v340_v12, %v339_v11  ;;  %v342_v20 = vld [vmem:[#allocation6 + $0x78] sm:$0xff] }
  0x47   :  { %673 = vmatpush3.bf16.msra.mxu1 %v672_v30  ;;  %v732_v21 = vpack.c.bf16 %v342_v20, %v341_v19 }
  0x48   :  { %674 = vmatprep.subr.bf16.mxu1 %v817_v0 }
  0x49   :  { %652 = vmatpush3.bf16.msra.mxu0 %v651_v27 }
  0x4a   :  { %653 = vmatprep.subr.bf16.mxu0 %v817_v0 }
  0x4b   :  { %676 = vmatpush3.bf16.msra.mxu1 %v675_v36 }
  0x4c   :  { %677 = vmatprep.subr.bf16.mxu1 %v817_v0 }
  0x4d   :  { %655 = vmatpush3.bf16.msra.mxu0 %v654_v33 }
  0x4e   :  { %656 = vmatprep.subr.bf16.mxu0 %v817_v0 }
  0x4f   :  { %679 = vmatpush3.bf16.msra.mxu1 %v678_v42 }
  0x50   :  { %680 = vmatprep.subr.bf16.mxu1 %v817_v0 }
  0x51   :  { %658 = vmatpush3.bf16.msra.mxu0 %v657_v39 }
  0x52   :  { %659 = vmatprep.subr.bf16.mxu0 %v817_v0 }
  0x53   :  { %682 = vmatpush3.bf16.msra.mxu1 %v681_v46 }
  0x54   :  { %683 = vmatprep.subr.bf16.mxu1 %v817_v0 }
  0x55   :  { %661 = vmatpush3.bf16.msra.mxu0 %v660_v45 }
  0x56   :  { %686 = vmatprep.subr.bf16.mxu0 %v817_v0 }
  0x57   :  { %685 = vmatpush3.bf16.msra.mxu1 %v684_v50 }
  0x58   :  { %531 = vmatmul.mubr.f32.vlgmr.msra.gmra.mrb[0].mxu0 %v67_v47  ;;  %710 = vmatprep.subr.bf16.mxu1 %v817_v0 }
  0x59   :  { %688 = vmatpush3.bf16.msra.mxu0 %v663_v15  ;;  %600 = vmatprep.mubr.msk.f32.mxu0 %vm818_vm0, %v819_v1 }
  0x5a   :  { %689 = vmatprep.subr.bf16.mxu0 %v817_v0 }
  0x5d   :  { %691 = vmatpush3.bf16.msra.mxu0 %v666_v18 }
  0x5e   :  { %692 = vmatprep.subr.bf16.mxu0 %v817_v0 }
  0x61   :  { %694 = vmatpush3.bf16.msra.mxu0 %v669_v24 }
  0x62   :  { %695 = vmatprep.subr.bf16.mxu0 %v817_v0 }
  0x65   :  { %697 = vmatpush3.bf16.msra.mxu0 %v672_v30 }
  0x66   :  { %698 = vmatprep.subr.bf16.mxu0 %v817_v0 }
  0x69   :  { %700 = vmatpush3.bf16.msra.mxu0 %v675_v36 }
  0x6a   :  { %701 = vmatprep.subr.bf16.mxu0 %v817_v0 }
  0x6d   :  { %703 = vmatpush3.bf16.msra.mxu0 %v678_v42 }
  0x6e   :  { %704 = vmatprep.subr.bf16.mxu0 %v817_v0 }
  0x71   :  { %706 = vmatpush3.bf16.msra.mxu0 %v681_v46 }
  0x72   :  { %707 = vmatprep.subr.bf16.mxu0 %v817_v0 }
  0x75   :  { %709 = vmatpush3.bf16.msra.mxu0 %v684_v50 }
 0x12b   :  { %v157_v52 = vpop.f32.mrb[0].mxu0 }
 0x12c   :  { %v158_v53 = vadd.f32 %v427_v51, %v157_v52  ;;  %v532_v54 = vpop.f32.mrb[1].mxu0 }
 0x12e   :  { %v161_v55 = vmax.f32 %v158_v53, 0.0 }
 0x130   :  { %566 = vmatmul.mubr.f32.vlgmr.msra.gmra.mrb[0].mxu1 %v161_v55 }
 0x131   :  { %635 = vmatprep.mubr.msk.f32.mxu1 %vm818_vm0, %v819_v1  ;;  %712 = vmatpush3.bf16.msra.mxu1 %v711_v59  ;;  %v335_v1 = vld [vmem:[#allocation6 + $0x40] sm:$0xff] }
 0x132   :  { %713 = vmatprep.subr.bf16.mxu1 %v817_v0  ;;  %v723_v7 = vpack.c.bf16 %v336_v6, %v335_v1 }
 0x135   :  { %715 = vmatpush3.bf16.msra.mxu1 %v714_v61 }
 0x136   :  { %716 = vmatprep.subr.bf16.mxu1 %v817_v0 }
 0x139   :  { %718 = vmatpush3.bf16.msra.mxu1 %v717_v2 }
 0x13a   :  { %719 = vmatprep.subr.bf16.mxu1 %v817_v0 }
 0x13d   :  { %721 = vmatpush3.bf16.msra.mxu1 %v720_v5 }
 0x13e   :  { %722 = vmatprep.subr.bf16.mxu1 %v817_v0 }
 0x141   :  { %724 = vmatpush3.bf16.msra.mxu1 %v723_v7 }
 0x142   :  { %725 = vmatprep.subr.bf16.mxu1 %v817_v0 }
 0x145   :  { %727 = vmatpush3.bf16.msra.mxu1 %v726_v10 }
 0x146   :  { %728 = vmatprep.subr.bf16.mxu1 %v817_v0 }
 0x149   :  { %730 = vmatpush3.bf16.msra.mxu1 %v729_v13 }
 0x14a   :  { %731 = vmatprep.subr.bf16.mxu1 %v817_v0  ;;  %v429_v0 = vld [vmem:[%s973_s6] ss:$0 sm:$0xff] }
 0x14d   :  { %733 = vmatpush3.bf16.msra.mxu1 %v732_v21 }
 0x203   :  { %v251_v15 = vpop.f32.mrb[0].mxu1 }
 0x204   :  { %v252_v16 = vadd.f32 %v428_v14, %v251_v15  ;;  %v567_v17 = vpop.f32.mrb[1].mxu1 }
 0x206   :  { %v255_v18 = vmax.f32 %v252_v16, 0.0 }
 0x208   :  { %601 = vmatmul.mubr.f32.vlgmr.msra.gmra.mrb[2].mxu0 %v255_v18 }
 0x2db   :  { %v322_v22 = vpop.f32.mrb[2].mxu0 }
 0x2dc   :  { %v323_v23 = vadd.f32 %v428_v14, %v322_v22  ;;  %v602_v24 = vpop.f32.mrb[3].mxu0 }
 0x2de   :  { %v326_v25 = vmax.f32 %v323_v23, 0.0 }
 0x2e0   :  { %636 = vmatmul.mubr.f32.vlgmr.msra.gmra.mrb[2].mxu1 %v326_v25 }
 0x3b3   :  { %v416_v26 = vpop.f32.mrb[2].mxu1 }
 0x3b4   :  { %v417_v27 = vadd.f32 %v429_v0, %v416_v26  ;;  %v637_v28 = vpop.f32.mrb[3].mxu1 }
 0x3b6   :  { %420 = vst [vmem:[%s974_s7] sm:$0xff] %v417_v27 }
 0x3b7   :  { %425 = vsyncpa [#allocation3], 1 }
 0x3b8   :  { %426 = vsyncpa [#allocation5], 1 }

</bundles_post_ra>
